<compile_context>
chip_gen: v6e
topology: v6e:2x2x1
jax: 0.10.0
libtpu: 0.0.40
codegen_flags: <defaults>
</compile_context>

<pallas_src>
import jax
import jax.numpy as jnp
from jax.experimental import pallas as pl
from jax.experimental.pallas import tpu as pltpu


def mlp_kernel(x_ref, w1t_ref, b1_ref, w2t_ref, b2_ref, o_ref):
    # Hot path: two chained MXU matmuls + VPU bias adds, fp32, all in VMEM.
    # Weights arrive pre-transposed as [in, out] (N on the lane axis), so the
    # MXU RHS is feed-aligned and no transpose/XLU work is needed here.
    x = x_ref[...]
    h = jnp.dot(x, w1t_ref[...], preferred_element_type=jnp.float32) + b1_ref[...]
    y = jnp.dot(h, w2t_ref[...], preferred_element_type=jnp.float32) + b2_ref[...]
    o_ref[...] = y.astype(o_ref.dtype)


def _round_up(n, m):
    return pl.cdiv(n, m) * m


def make_mlp_forward(w1, b1, w2, b2):
    """Prepare padded / pre-transposed weights ONCE; return a jitted fwd(x).

    w1: [Dh, Din]; b1: [Dh]; w2: [Dout, Dh]; b2: [Dout]  (PyTorch layout).
    Returned fn takes x: [B, Din] and returns [B, Dout].
    """
    Dh, Din = w1.shape
    Dout = w2.shape[0]

    SUB, LANE = 8, 128
    Dinp = _round_up(Din, LANE)
    Dhp = _round_up(Dh, LANE)
    Doutp = _round_up(Dout, LANE)

    # One-time weight prep (outside the per-call hot path). Zero padding keeps
    # the valid [B, Dout] output window exact.
    w1t = jnp.zeros((Dinp, Dhp), w1.dtype).at[:Din, :Dh].set(w1.T)
    b1p = jnp.zeros((1, Dhp), b1.dtype).at[0, :Dh].set(b1)
    w2t = jnp.zeros((Dhp, Doutp), w2.dtype).at[:Dh, :Dout].set(w2.T)
    b2p = jnp.zeros((1, Doutp), b2.dtype).at[0, :Dout].set(b2)
    w1t, b1p, w2t, b2p = jax.device_put((w1t, b1p, w2t, b2p))

    def forward(x):
        B = x.shape[0]
        assert x.shape[1] == Din
        Bp = _round_up(B, SUB)

        # Single fused pad op (lane-dense shape), not zeros + scatter.
        xp = jnp.pad(x, ((0, Bp - B), (0, Dinp - Din)))

        flops = 2 * Bp * Dinp * Dhp + 2 * Bp * Dhp * Doutp
        bytes_accessed = 4 * (
            Bp * Dinp          # x
            + Dinp * Dhp       # W1^T
            + Dhp              # b1
            + Dhp * Doutp      # W2^T
            + Doutp            # b2
            + Bp * Doutp       # out
        )

        # Single-shot call: no grid, no index maps, everything resident in VMEM.
        out_p = pl.pallas_call(
            mlp_kernel,
            out_shape=jax.ShapeDtypeStruct((Bp, Doutp), x.dtype),
            in_specs=[
                pl.BlockSpec(memory_space=pltpu.MemorySpace.VMEM),
                pl.BlockSpec(memory_space=pltpu.MemorySpace.VMEM),
                pl.BlockSpec(memory_space=pltpu.MemorySpace.VMEM),
                pl.BlockSpec(memory_space=pltpu.MemorySpace.VMEM),
                pl.BlockSpec(memory_space=pltpu.MemorySpace.VMEM),
            ],
            out_specs=pl.BlockSpec(memory_space=pltpu.MemorySpace.VMEM),
            cost_estimate=pl.CostEstimate(
                flops=flops, transcendentals=0, bytes_accessed=bytes_accessed
            ),
        )(xp, w1t, b1p, w2t, b2p)

        return out_p[:B, :Dout]

    return jax.jit(forward)


if __name__ == "__main__":
    key = jax.random.PRNGKey(0)
    k_x, k_w1, k_b1, k_w2, k_b2 = jax.random.split(key, 5)

    B, D = 10, 10  # matches torch.randn(10, 10) and Linear(10, 10)

    x = jax.random.normal(k_x, (B, D), dtype=jnp.float32)

    # Deterministic init mimicking nn.Linear's uniform(-1/sqrt(in), 1/sqrt(in))
    bound = 1.0 / jnp.sqrt(jnp.float32(D))
    w1 = jax.random.uniform(k_w1, (D, D), jnp.float32, -bound, bound)
    b1 = jax.random.uniform(k_b1, (D,), jnp.float32, -bound, bound)
    w2 = jax.random.uniform(k_w2, (D, D), jnp.float32, -bound, bound)
    b2 = jax.random.uniform(k_b2, (D,), jnp.float32, -bound, bound)

    mlp_forward = make_mlp_forward(w1, b1, w2, b2)  # weight prep hoisted here

    out = mlp_forward(x)
    out = jax.block_until_ready(out)

    # Sanity check against plain-JAX reference (same default dot precision).
    ref = (x @ w1.T + b1) @ w2.T + b2
    assert out.shape == (B, D)
    assert jnp.allclose(out, ref, atol=1e-5, rtol=1e-5)

    print("KERNEL_OK")
</pallas_src>

<mosaic_0001>
module attributes {stable_mosaic.version = 11 : i64} {
  func.func @mlp_kernel(%arg0: memref<16x128xf32, #tpu.memory_space<vmem>>, %arg1: memref<128x128xf32, #tpu.memory_space<vmem>>, %arg2: memref<1x128xf32, #tpu.memory_space<vmem>>, %arg3: memref<128x128xf32, #tpu.memory_space<vmem>>, %arg4: memref<1x128xf32, #tpu.memory_space<vmem>>, %arg5: memref<16x128xf32, #tpu.memory_space<vmem>>) attributes {dimension_semantics = [], scalar_prefetch = 0 : i64, scratch_operands = 0 : i64, tpu.core_type = #tpu.core_type<tc>} {
    %c0 = arith.constant 0 : index
    %c0_0 = arith.constant 0 : index
    %0 = vector.load %arg0[%c0, %c0_0] : memref<16x128xf32, #tpu.memory_space<vmem>>, vector<16x128xf32>
    %c0_1 = arith.constant 0 : index
    %c0_2 = arith.constant 0 : index
    %1 = vector.load %arg1[%c0_1, %c0_2] : memref<128x128xf32, #tpu.memory_space<vmem>>, vector<128x128xf32>
    %cst = arith.constant dense<0.000000e+00> : vector<16x128xf32>
    %2 = tpu.matmul %0, %1, %cst {dimension_numbers = #tpu.dot_dimension_numbers<[1], [0], [0], [1], [0, 0, 1, 1], [], []>} : vector<16x128xf32>, vector<128x128xf32>, vector<16x128xf32> -> vector<16x128xf32>
    %c0_3 = arith.constant 0 : index
    %c0_4 = arith.constant 0 : index
    %3 = vector.load %arg2[%c0_3, %c0_4] : memref<1x128xf32, #tpu.memory_space<vmem>>, vector<1x128xf32>
    %4 = vector.broadcast %3 : vector<1x128xf32> to vector<16x128xf32>
    %5 = arith.addf %2, %4 : vector<16x128xf32>
    %c0_5 = arith.constant 0 : index
    %c0_6 = arith.constant 0 : index
    %6 = vector.load %arg3[%c0_5, %c0_6] : memref<128x128xf32, #tpu.memory_space<vmem>>, vector<128x128xf32>
    %cst_7 = arith.constant dense<0.000000e+00> : vector<16x128xf32>
    %7 = tpu.matmul %5, %6, %cst_7 {dimension_numbers = #tpu.dot_dimension_numbers<[1], [0], [0], [1], [0, 0, 1, 1], [], []>} : vector<16x128xf32>, vector<128x128xf32>, vector<16x128xf32> -> vector<16x128xf32>
    %c0_8 = arith.constant 0 : index
    %c0_9 = arith.constant 0 : index
    %8 = vector.load %arg4[%c0_8, %c0_9] : memref<1x128xf32, #tpu.memory_space<vmem>>, vector<1x128xf32>
    %9 = vector.broadcast %8 : vector<1x128xf32> to vector<16x128xf32>
    %10 = arith.addf %7, %9 : vector<16x128xf32>
    %c0_10 = arith.constant 0 : index
    %c0_11 = arith.constant 0 : index
    %11 = vector.load %arg5[%c0_10, %c0_11] : memref<16x128xf32, #tpu.memory_space<vmem>>, vector<16x128xf32>
    tpu.vector_store %arg5[%c0_10, %c0_11], %10 {strides = array<i32>} : memref<16x128xf32, #tpu.memory_space<vmem>>, vector<16x128xf32>,
    return
  }
}

</mosaic_0001>

<bundles_post_ra>
// kernel: forward.1
= control target key start
LH: loop header
LB: loop body
LE: loop exit
PB: predicated region body
PF: predicated region fallthrough
CT: control target
= control target key end

     0   :  { %10 = vsyncpa [#allocation3], 0  ;;  %s511_s0 = inlined_call_operand.vmem [shape: f32[16,128], index: 0, kind: input, shape index: {}]   ;;  %s512_s1 = inlined_call_operand.hbm [shape: f32[128,128], index: 1, kind: input, shape index: {}]   ;;  %s513_s2 = inlined_call_operand.vmem [shape: f32[1,128], index: 2, kind: input, shape index: {}]   ;;  %s514_s3 = inlined_call_operand.hbm [shape: f32[128,128], index: 3, kind: input, shape index: {}]   ;;  %s515_s4 = inlined_call_operand.vmem [shape: f32[1,128], index: 4, kind: input, shape index: {}]   ;;  %s516_s5 = inlined_call_operand.hbm [shape: f32[16,128], index: 5, kind: output, shape index: {}]  }
   0x1   :  { %11 = vsyncpa [#allocation6], 0 }
   0x2   :  { %12 = vsyncpa [#allocation4], 0  ;;  %s446_s18 = smov [#allocation2]  }
   0x3   :  { %s20_s19 = sshll.u32 %s446_s18, 4  ;;  %s21_s19 = int_to_ptr.vmem [resolvable:$true] %s20_s19 }
   0x4   :  { %s388_s20 = scalar_lea.vmem %s21_s19, 2048  ;;  %p393_p1 = scmp.lt.s32.totalorder %s21_s19, %s21_s19 }
   0x5   :  { %p389_p0 = scmp.ne.s32.totalorder %s21_s19, %s388_s20  ;;  %p394_p2 = scmp.lt.s32.totalorder %s388_s20, %s388_s20 }
   0x7   :  { %p395_p3 = por %p394_p2, %p393_p1 }
   0x9   :  { %p396_p4 = pnand %p395_p3, %p389_p0 }
   0xb   :  { %399 = shalt.err (!%p396_p4)
}
   0xc   :  { %s447_s21 = smov 128   ;;  %s448_s22 = smov 8  }
   0xd   :  { %26 = dma.hbm_to_vmem [thread:$0]  %s512_s1, 2048, %s21_s19, [#allocation3], %s447_s21, %s447_s21, %s448_s22  }
   0xe   :  { %s449_s25 = smov [#allocation5]  }
   0xf   :  { %s34_s26 = sshll.u32 %s449_s25, 4  ;;  %s35_s26 = int_to_ptr.vmem [resolvable:$true] %s34_s26 }
  0x10   :  { %s408_s27 = scalar_lea.vmem %s35_s26, 2048  ;;  %p413_p6 = scmp.lt.s32.totalorder %s35_s26, %s35_s26 }
  0x11   :  { %p409_p5 = scmp.ne.s32.totalorder %s35_s26, %s408_s27  ;;  %p414_p7 = scmp.lt.s32.totalorder %s408_s27, %s408_s27 }
  0x13   :  { %p415_p8 = por %p414_p7, %p413_p6 }
  0x15   :  { %p416_p9 = pnand %p415_p8, %p409_p5 }
  0x17   :  { %419 = shalt.err (!%p416_p9)
}
  0x18   :  { %40 = dma.hbm_to_vmem [thread:$0]  %s514_s3, 2048, %s35_s26, [#allocation6], %s447_s21, %s447_s21, %s448_s22  }
  0x19   :  { %440 = dma.done.wait [#allocation3], 2048  }
  0x1a   :  { %441 = vsyncadd [#allocation3], 4294965248 }
  0x1b   :  { %442 = dma.done.wait [#allocation6], 2048  }
  0x1c   :  { %443 = vsyncadd [#allocation6], 4294965248  ;;  %v66_v0 = vld [vmem:[#allocation2 + $0x78] sm:$0xff]  ;;  %v65_v1 = vld [vmem:[#allocation2 + $0x70] sm:$0xff]  ;;  %s450_s10 = smov [#allocation7]  }
  0x1d   :  { %305 = vmatprep.subr.mxu0 %v66_v0  ;;  %v64_v2 = vld [vmem:[#allocation2 + $0x68] sm:$0xff]  ;;  %v63_v3 = vld [vmem:[#allocation2 + $0x60] sm:$0xff]  ;;  %v62_v5 = vld [vmem:[#allocation2 + $0x58] sm:$0xff]  ;;  %s254_s11 = sshll.u32 %s450_s10, 4  ;;  %s255_s11 = int_to_ptr.vmem [resolvable:$true] %s254_s11 }
  0x1e   :  { %306 = vmatpush3.msra.mxu0 %v66_v0  ;;  %v49_v4 = vld [vmem:[%s511_s0] sm:$0xff]  ;;  %v164_v6 = vld [vmem:[#allocation5 + $0x78] sm:$0xff]  ;;  %v163_v7 = vld [vmem:[#allocation5 + $0x70] sm:$0xff]  ;;  %s420_s12 = scalar_lea.vmem %s255_s11, 256  ;;  %p425_p11 = scmp.lt.s32.totalorder %s255_s11, %s255_s11 }
  0x1f   :  { %307 = vmatprep.subr.mxu0 %v65_v1  ;;  %337 = vmatprep.mubr.f32.mxu0 %v49_v4  ;;  %v61_v8 = vld [vmem:[#allocation2 + $0x50] sm:$0xff]  ;;  %v162_v9 = vld [vmem:[#allocation5 + $0x68] sm:$0xff]  ;;  %v161_v11 = vld [vmem:[#allocation5 + $0x60] sm:$0xff]  ;;  %p421_p10 = scmp.ne.s32.totalorder %s255_s11, %s420_s12  ;;  %p426_p12 = scmp.lt.s32.totalorder %s420_s12, %s420_s12 }
  0x20   :  { %308 = vmatpush3.msra.mxu0 %v65_v1  ;;  %340 = vmatprep.subr.mxu1 %v164_v6  ;;  %v60_v10 = vld [vmem:[#allocation2 + $0x48] sm:$0xff]  ;;  %v59_v12 = vld [vmem:[#allocation2 + $0x40] sm:$0xff]  ;;  %v160_v13 = vld [vmem:[#allocation5 + $0x58] sm:$0xff] }
  0x21   :  { %309 = vmatprep.subr.mxu0 %v64_v2  ;;  %341 = vmatpush3.msra.mxu1 %v164_v6  ;;  %v58_v14 = vld [vmem:[#allocation2 + $0x38] sm:$0xff]  ;;  %v159_v15 = vld [vmem:[#allocation5 + $0x50] sm:$0xff]  ;;  %v158_v17 = vld [vmem:[#allocation5 + $0x48] sm:$0xff]  ;;  %p427_p13 = por %p426_p12, %p425_p11 }
  0x22   :  { %310 = vmatpush3.msra.mxu0 %v64_v2  ;;  %342 = vmatprep.subr.mxu1 %v163_v7  ;;  %v57_v16 = vld [vmem:[#allocation2 + $0x30] sm:$0xff]  ;;  %v56_v18 = vld [vmem:[#allocation2 + $0x28] sm:$0xff]  ;;  %v157_v19 = vld [vmem:[#allocation5 + $0x40] sm:$0xff] }
  0x23   :  { %311 = vmatprep.subr.mxu0 %v63_v3  ;;  %343 = vmatpush3.msra.mxu1 %v163_v7  ;;  %v55_v20 = vld [vmem:[#allocation2 + $0x20] sm:$0xff]  ;;  %v156_v21 = vld [vmem:[#allocation5 + $0x38] sm:$0xff]  ;;  %v155_v23 = vld [vmem:[#allocation5 + $0x30] sm:$0xff]  ;;  %p428_p0 = pnand %p427_p13, %p421_p10 }
  0x24   :  { %312 = vmatpush3.msra.mxu0 %v63_v3  ;;  %344 = vmatprep.subr.mxu1 %v162_v9  ;;  %v54_v22 = vld [vmem:[#allocation2 + $0x18] sm:$0xff]  ;;  %v53_v24 = vld [vmem:[#allocation2 + $0x10] sm:$0xff]  ;;  %v154_v25 = vld [vmem:[#allocation5 + $0x28] sm:$0xff] }
  0x25   :  { %313 = vmatprep.subr.mxu0 %v62_v5  ;;  %345 = vmatpush3.msra.mxu1 %v162_v9  ;;  %v52_v26 = vld [vmem:[#allocation2 + $0x8] sm:$0xff]  ;;  %v153_v27 = vld [vmem:[#allocation5 + $0x20] sm:$0xff]  ;;  %v152_v29 = vld [vmem:[#allocation5 + $0x18] sm:$0xff] }
  0x26   :  { %314 = vmatpush3.msra.mxu0 %v62_v5  ;;  %346 = vmatprep.subr.mxu1 %v161_v11  ;;  %v51_v28 = vld [vmem:[#allocation2] sm:$0xff]  ;;  %v50_v30 = vld [vmem:[%s511_s0 + $0x8] sm:$0xff]  ;;  %v151_v31 = vld [vmem:[#allocation5 + $0x10] sm:$0xff] }
  0x27   :  { %315 = vmatprep.subr.mxu0 %v61_v8  ;;  %347 = vmatpush3.msra.mxu1 %v161_v11  ;;  %v150_v32 = vld [vmem:[#allocation5 + $0x8] sm:$0xff]  ;;  %v149_v33 = vld [vmem:[#allocation5] sm:$0xff] }
  0x28   :  { %316 = vmatpush3.msra.mxu0 %v61_v8  ;;  %348 = vmatprep.subr.mxu1 %v160_v13  ;;  %v267_v35 = vld [vmem:[%s513_s2] ss:$0 sm:$0xff] }
  0x29   :  { %317 = vmatprep.subr.mxu0 %v60_v10  ;;  %349 = vmatpush3.msra.mxu1 %v160_v13  ;;  %v268_v39 = vld [vmem:[%s515_s4] ss:$0 sm:$0xff] }
  0x2a   :  { %318 = vmatpush3.msra.mxu0 %v60_v10  ;;  %350 = vmatprep.subr.mxu1 %v159_v15 }
  0x2b   :  { %319 = vmatprep.subr.mxu0 %v59_v12  ;;  %351 = vmatpush3.msra.mxu1 %v159_v15 }
  0x2c   :  { %320 = vmatpush3.msra.mxu0 %v59_v12  ;;  %352 = vmatprep.subr.mxu1 %v158_v17 }
  0x2d   :  { %321 = vmatprep.subr.mxu0 %v58_v14  ;;  %353 = vmatpush3.msra.mxu1 %v158_v17 }
  0x2e   :  { %322 = vmatpush3.msra.mxu0 %v58_v14  ;;  %354 = vmatprep.subr.mxu1 %v157_v19 }
  0x2f   :  { %323 = vmatprep.subr.mxu0 %v57_v16  ;;  %355 = vmatpush3.msra.mxu1 %v157_v19 }
  0x30   :  { %324 = vmatpush3.msra.mxu0 %v57_v16  ;;  %356 = vmatprep.subr.mxu1 %v156_v21 }
  0x31   :  { %325 = vmatprep.subr.mxu0 %v56_v18  ;;  %357 = vmatpush3.msra.mxu1 %v156_v21 }
  0x32   :  { %326 = vmatpush3.msra.mxu0 %v56_v18  ;;  %358 = vmatprep.subr.mxu1 %v155_v23 }
  0x33   :  { %327 = vmatprep.subr.mxu0 %v55_v20  ;;  %359 = vmatpush3.msra.mxu1 %v155_v23 }
  0x34   :  { %328 = vmatpush3.msra.mxu0 %v55_v20  ;;  %360 = vmatprep.subr.mxu1 %v154_v25 }
  0x35   :  { %329 = vmatprep.subr.mxu0 %v54_v22  ;;  %361 = vmatpush3.msra.mxu1 %v154_v25 }
  0x36   :  { %330 = vmatpush3.msra.mxu0 %v54_v22  ;;  %362 = vmatprep.subr.mxu1 %v153_v27 }
  0x37   :  { %331 = vmatprep.subr.mxu0 %v53_v24  ;;  %363 = vmatpush3.msra.mxu1 %v153_v27 }
  0x38   :  { %332 = vmatpush3.msra.mxu0 %v53_v24  ;;  %364 = vmatprep.subr.mxu1 %v152_v29 }
  0x39   :  { %333 = vmatprep.subr.mxu0 %v52_v26  ;;  %365 = vmatpush3.msra.mxu1 %v152_v29 }
  0x3a   :  { %334 = vmatpush3.msra.mxu0 %v52_v26  ;;  %366 = vmatprep.subr.mxu1 %v151_v31 }
  0x3b   :  { %335 = vmatprep.subr.mxu0 %v51_v28  ;;  %367 = vmatpush3.msra.mxu1 %v151_v31 }
  0x3c   :  { %336 = vmatpush3.msra.mxu0 %v51_v28  ;;  %368 = vmatprep.subr.mxu1 %v150_v32 }
  0x3d   :  { %338 = vmatmul.mubr.f32.vlgmr.msra.gmra.mxu0 %v50_v30  ;;  %369 = vmatpush3.msra.mxu1 %v150_v32 }
  0x3e   :  { %370 = vmatprep.subr.mxu1 %v149_v33 }
  0x3f   :  { %371 = vmatpush3.msra.mxu1 %v149_v33 }
  0xfd   :  { %v339_v34 = vpop.f32.mrf.mxu0 }
  0xfe   :  { %v146_v38 = vadd.f32 %v339_v34, %v267_v35 }
  0xff   :  { %v140_v36 = vpop.f32.mrf.mxu0 }
 0x100   :  { %v141_v37 = vadd.f32 %v267_v35, %v140_v36 }
 0x102   :  { %372 = vmatprep.mubr.f32.mxu1 %v141_v37 }
 0x103   :  { %373 = vmatmul.mubr.f32.vlgmr.msra.gmra.mxu1 %v146_v38 }
 0x1c3   :  { %v374_v40 = vpop.f32.mrf.mxu1 }
 0x1c4   :  { %v244_v41 = vadd.f32 %v374_v40, %v268_v39 }
 0x1c5   :  { %v238_v42 = vpop.f32.mrf.mxu1 }
 0x1c6   :  { %248 = vst [vmem:[#allocation7 + $0x8] sm:$0xff] %v244_v41  ;;  %v239_v43 = vadd.f32 %v268_v39, %v238_v42 }
 0x1c8   :  { %247 = vst [vmem:[#allocation7] sm:$0xff] %v239_v43 }
 0x1c9   :  { %431 = shalt.err (!%p428_p0)
}
 0x1ca   :  { %260 = dma.vmem_to_hbm [thread:$0]  %s255_s11, 256, %s516_s5, [#allocation4], %s447_s21, %s447_s21, %s448_s22  }
 0x1cb   :  { %444 = dma.done.wait [#allocation4], 256  }
 0x1cc   :  { %445 = vsyncadd [#allocation4], 4294967040 }
 0x1cd   :  { %264 = vsyncpa [#allocation3], 1 }
 0x1ce   :  { %265 = vsyncpa [#allocation6], 1 }
 0x1cf   :  { %266 = vsyncpa [#allocation4], 1 }

</bundles_post_ra>
